<compile_context>
chip_gen: v6e
topology: v6e:2x2x1
jax: 0.10.0
libtpu: 0.0.40
codegen_flags: <defaults>
</compile_context>

<pallas_src>
import functools

import jax
import jax.numpy as jnp
from jax.experimental import pallas as pl
from jax.experimental.pallas import tpu as pltpu

_LANE = 128
_GROUP = 16            # samples per 128-lane row (8 features each)
_SLAB_ROWS = 392       # 3 * 128 block-diagonal weights + 8-row bias block
_TBR_DEFAULT = 2048    # rows per tile = 32768 samples = 1 MiB x-tile

# Parameter slab layout (f32, (392, 128)):
#   rows   0:128  block-diag W1: [8g+k, 8g+j] = W1[k,j]   (k<8, j<6)
#   rows 128:256  block-diag W2: [8g+k, 8g+j] = W2[k,j]   (k<6, j<4)
#   rows 256:384  block-diag W3: [8g+k,    g] = W3[k,0]   (k<4)  -> compacts to lanes 0..15
#   row  384      b1 tiled over 16 groups (lanes 8g+j, j<6)
#   row  385      b2 tiled over 16 groups (lanes 8g+j, j<4)
#   row  386      b3 on lanes 0..15
#   rows 387:392  zero padding (sublane alignment)


def mlp_kernel(p_ref, x_ref, o_ref):
    x = x_ref[...]                       # (TB, 128): 16 samples per row, lane-dense

    bd1 = p_ref[0:128, :]                # whole-vreg-aligned weight slabs
    bd2 = p_ref[128:256, :]
    bd3 = p_ref[256:384, :]
    b1 = p_ref[384:385, :]               # (1, 128) full-lane bias rows
    b2 = p_ref[385:386, :]
    b3 = p_ref[386:387, :]

    # Padded lanes give sigmoid(0)=0.5 junk; the next layer's zero weight rows
    # for those lanes keep the valid lanes exact.
    h1 = jax.nn.sigmoid(jnp.dot(x, bd1, preferred_element_type=jnp.float32) + b1)
    h2 = jax.nn.sigmoid(jnp.dot(h1, bd2, preferred_element_type=jnp.float32) + b2)
    h3 = jax.nn.sigmoid(jnp.dot(h2, bd3, preferred_element_type=jnp.float32) + b3)

    # Layer 3 already placed sample (row r, group g)'s output on lane g.
    o_ref[...] = h3[:, 0:_GROUP].astype(o_ref.dtype)     # (TB, 16)


def pack_params(params):
    """Pack (w1, b1, w2, b2, w3, b3) into one (392, 128) f32 slab (done once)."""
    w1, b1, w2, b2, w3, b3 = params      # w*: (in, out) so forward is x @ w + b
    f32 = jnp.float32

    w1p = jnp.zeros((8, 8), f32).at[:8, :6].set(jnp.asarray(w1, f32))
    w2p = jnp.zeros((8, 8), f32).at[:6, :4].set(jnp.asarray(w2, f32))
    bd1 = jnp.kron(jnp.eye(_GROUP, dtype=f32), w1p)       # (128, 128)
    bd2 = jnp.kron(jnp.eye(_GROUP, dtype=f32), w2p)       # (128, 128)

    w3col = jnp.zeros((8,), f32).at[:4].set(jnp.asarray(w3, f32).reshape(4))
    bd3_small = jnp.einsum("gh,k->gkh", jnp.eye(_GROUP, dtype=f32), w3col)
    bd3 = jnp.zeros((128, 128), f32).at[:, :_GROUP].set(bd3_small.reshape(128, _GROUP))

    b1t = jnp.tile(jnp.zeros((8,), f32).at[:6].set(jnp.asarray(b1, f32).reshape(6)), _GROUP)
    b2t = jnp.tile(jnp.zeros((8,), f32).at[:4].set(jnp.asarray(b2, f32).reshape(4)), _GROUP)
    b3t = jnp.zeros((128,), f32).at[:_GROUP].set(jnp.asarray(b3, f32).reshape(1)[0])

    slab = jnp.zeros((_SLAB_ROWS, _LANE), f32)
    slab = slab.at[0:128].set(bd1).at[128:256].set(bd2).at[256:384].set(bd3)
    slab = slab.at[384].set(b1t).at[385].set(b2t).at[386].set(b3t)
    return slab


def _round_up(v, m):
    return -(-v // m) * m


def _pick_tiles(r, tbr_max):
    """Choose (tile_rows, grid_len) for r 128-lane rows."""
    tbr_max = max(8, _round_up(tbr_max, 8))
    if r <= max(8, tbr_max // 4):
        return r, 1                       # single block; block dim == full dim is legal
    # Large input: keep >= ~4 grid steps so v7x can shard the parallel batch
    # axis across both TensorCores; cap the tile at tbr_max (VMEM budget).
    tbr = min(tbr_max, _round_up(-(-r // 4), 8))
    return tbr, -(-r // tbr)


@functools.partial(jax.jit, static_argnames=("tile_rows",))
def mlp_forward(x, param_slab, tile_rows=_TBR_DEFAULT):
    """x: (B, 8) float, param_slab: (392, 128) f32 from pack_params. Returns (B, 1) f32."""
    B, F = x.shape
    assert F == 8
    r = -(-B // _GROUP)                   # 128-lane rows (16 samples each)
    bpad = r * _GROUP

    xf = x.astype(jnp.float32)
    if bpad != B:                          # only copies for a ragged 16-sample tail
        xf = jnp.zeros((bpad, 8), jnp.float32).at[:B].set(xf)
    xr = xf.reshape(r, _GROUP * 8)         # contiguous, zero-copy: (r, 128)

    tbr, grid = _pick_tiles(r, tile_rows)

    out = pl.pallas_call(
        mlp_kernel,
        out_shape=jax.ShapeDtypeStruct((r, _GROUP), jnp.float32),
        grid=(grid,),
        in_specs=[
            pl.BlockSpec((_SLAB_ROWS, _LANE), lambda i: (0, 0)),  # params: resident, one DMA
            pl.BlockSpec((tbr, _LANE), lambda i: (i, 0)),         # lane-dense batch tile
        ],
        out_specs=pl.BlockSpec((tbr, _GROUP), lambda i: (i, 0)),
        compiler_params=pltpu.CompilerParams(
            dimension_semantics=("parallel",),      # v7x: shard batch over both TCs
            vmem_limit_bytes=32 * 1024 * 1024,
        ),
        cost_estimate=pl.CostEstimate(
            flops=int(2 * 76 * bpad),               # 2*(8*6 + 6*4 + 4*1) per sample
            transcendentals=int(11 * bpad),         # 6 + 4 + 1 sigmoids per sample
            bytes_accessed=int(36 * bpad),          # 32 B in + 4 B out per sample
        ),
    )(param_slab, xr)

    return out.reshape(bpad, 1)[:B]        # contiguous reshape back to (B, 1)


def init_params(key):
    # Deterministic init mimicking torch.nn.Linear (uniform(-1/sqrt(fan_in), +)).
    def linear(key, fan_in, fan_out):
        kw, kb = jax.random.split(key)
        bound = 1.0 / jnp.sqrt(jnp.float32(fan_in))
        w = jax.random.uniform(kw, (fan_in, fan_out), jnp.float32, -bound, bound)
        b = jax.random.uniform(kb, (1, fan_out), jnp.float32, -bound, bound)
        return w, b

    k1, k2, k3 = jax.random.split(key, 3)
    w1, b1 = linear(k1, 8, 6)
    w2, b2 = linear(k2, 6, 4)
    w3, b3 = linear(k3, 4, 1)
    return w1, b1, w2, b2, w3, b3


def reference(x, params):
    w1, b1, w2, b2, w3, b3 = params
    h = jax.nn.sigmoid(x @ w1 + b1)
    h = jax.nn.sigmoid(h @ w2 + b2)
    return jax.nn.sigmoid(h @ w3 + b3)


if __name__ == "__main__":
    key = jax.random.PRNGKey(0)
    k_params, k_x1, k_x2 = jax.random.split(key, 3)
    params = init_params(k_params)
    slab = jax.block_until_ready(pack_params(params))

    # Small-batch check (tiny MLP from the module).
    B = 8
    x = jax.random.normal(k_x1, (B, 8), jnp.float32)
    out = jax.block_until_ready(mlp_forward(x, slab))
    ref = reference(x, params)
    assert out.shape == (B, 1)
    assert jnp.allclose(out, ref, atol=1e-5), "mismatch vs reference (B=8)"

    # Batch not a multiple of 16, single-block path.
    B2 = 300
    x2 = jax.random.normal(k_x2, (B2, 8), jnp.float32)
    out2 = jax.block_until_ready(mlp_forward(x2, slab))
    ref2 = reference(x2, params)
    assert out2.shape == (B2, 1)
    assert jnp.allclose(out2, ref2, atol=1e-5), "mismatch vs reference (B=300)"

    # Same batch forced through a multi-step grid (tile=8 rows -> grid=(3,),
    # ragged last block) to exercise the pipelined path at small shapes.
    out3 = jax.block_until_ready(mlp_forward(x2, slab, tile_rows=8))
    assert out3.shape == (B2, 1)
    assert jnp.allclose(out3, ref2, atol=1e-5), "mismatch vs reference (B=300, tiled)"

    print("KERNEL_OK")
</pallas_src>

<mosaic_0001>
module attributes {stable_mosaic.version = 11 : i64} {
  func.func @mlp_kernel(%arg0: i32, %arg1: memref<392x128xf32, #tpu.memory_space<vmem>>, %arg2: memref<1x128xf32, #tpu.memory_space<vmem>>, %arg3: memref<1x16xf32, #tpu.memory_space<vmem>>) attributes {dimension_semantics = [#tpu.dimension_semantics<parallel>], iteration_bounds = array<i64: 1>, scalar_prefetch = 0 : i64, scratch_operands = 0 : i64, tpu.core_type = #tpu.core_type<tc>, window_params = [{pipeline_mode = #tpu.pipeline_mode<synchronous>, transform_indices = @transform_0, window_bounds = array<i64: 392, 128>}, {transform_indices = @transform_1, window_bounds = array<i64: 1, 128>}, {transform_indices = @transform_2, window_bounds = array<i64: 1, 16>}]} {
    %c0 = arith.constant 0 : index
    %c0_0 = arith.constant 0 : index
    %0 = vector.load %arg2[%c0, %c0_0] : memref<1x128xf32, #tpu.memory_space<vmem>>, vector<1x128xf32>
    %c0_1 = arith.constant 0 : index
    %c0_2 = arith.constant 0 : index
    %1 = vector.load %arg1[%c0_1, %c0_2] : memref<392x128xf32, #tpu.memory_space<vmem>>, vector<128x128xf32>
    %c128 = arith.constant 128 : index
    %c0_3 = arith.constant 0 : index
    %2 = vector.load %arg1[%c128, %c0_3] : memref<392x128xf32, #tpu.memory_space<vmem>>, vector<128x128xf32>
    %c256 = arith.constant 256 : index
    %c0_4 = arith.constant 0 : index
    %3 = vector.load %arg1[%c256, %c0_4] : memref<392x128xf32, #tpu.memory_space<vmem>>, vector<128x128xf32>
    %c384 = arith.constant 384 : index
    %c0_5 = arith.constant 0 : index
    %4 = vector.load %arg1[%c384, %c0_5] : memref<392x128xf32, #tpu.memory_space<vmem>>, vector<1x128xf32>
    %c385 = arith.constant 385 : index
    %c0_6 = arith.constant 0 : index
    %5 = vector.load %arg1[%c385, %c0_6] : memref<392x128xf32, #tpu.memory_space<vmem>>, vector<1x128xf32>
    %c386 = arith.constant 386 : index
    %c0_7 = arith.constant 0 : index
    %6 = vector.load %arg1[%c386, %c0_7] : memref<392x128xf32, #tpu.memory_space<vmem>>, vector<1x128xf32>
    %cst = arith.constant dense<0.000000e+00> : vector<1x128xf32>
    %7 = tpu.matmul %0, %1, %cst {dimension_numbers = #tpu.dot_dimension_numbers<[1], [0], [0], [1], [0, 0, 1, 1], [], []>} : vector<1x128xf32>, vector<128x128xf32>, vector<1x128xf32> -> vector<1x128xf32>
    %8 = arith.addf %7, %4 : vector<1x128xf32>
    %9 = arith.negf %8 : vector<1x128xf32>
    %10 = math.exp %9 : vector<1x128xf32>
    %cst_8 = arith.constant 1.000000e+00 : f32
    %11 = vector.broadcast %cst_8 : f32 to vector<1x128xf32>
    %12 = arith.addf %11, %10 : vector<1x128xf32>
    %13 = arith.divf %11, %12 : vector<1x128xf32>
    %cst_9 = arith.constant dense<0.000000e+00> : vector<1x128xf32>
    %14 = tpu.matmul %13, %2, %cst_9 {dimension_numbers = #tpu.dot_dimension_numbers<[1], [0], [0], [1], [0, 0, 1, 1], [], []>} : vector<1x128xf32>, vector<128x128xf32>, vector<1x128xf32> -> vector<1x128xf32>
    %15 = arith.addf %14, %5 : vector<1x128xf32>
    %16 = arith.negf %15 : vector<1x128xf32>
    %17 = math.exp %16 : vector<1x128xf32>
    %cst_10 = arith.constant 1.000000e+00 : f32
    %18 = vector.broadcast %cst_10 : f32 to vector<1x128xf32>
    %19 = arith.addf %18, %17 : vector<1x128xf32>
    %20 = arith.divf %18, %19 : vector<1x128xf32>
    %cst_11 = arith.constant dense<0.000000e+00> : vector<1x128xf32>
    %21 = tpu.matmul %20, %3, %cst_11 {dimension_numbers = #tpu.dot_dimension_numbers<[1], [0], [0], [1], [0, 0, 1, 1], [], []>} : vector<1x128xf32>, vector<128x128xf32>, vector<1x128xf32> -> vector<1x128xf32>
    %22 = arith.addf %21, %6 : vector<1x128xf32>
    %23 = arith.negf %22 : vector<1x128xf32>
    %24 = math.exp %23 : vector<1x128xf32>
    %cst_12 = arith.constant 1.000000e+00 : f32
    %25 = vector.broadcast %cst_12 : f32 to vector<1x128xf32>
    %26 = arith.addf %25, %24 : vector<1x128xf32>
    %27 = arith.divf %25, %26 : vector<1x128xf32>
    %28 = vector.extract_strided_slice %27 {offsets = [0, 0], sizes = [1, 16], strides = [1, 1]} : vector<1x128xf32> to vector<1x16xf32>
    %c0_13 = arith.constant 0 : index
    %c0_14 = arith.constant 0 : index
    %29 = vector.load %arg3[%c0_13, %c0_14] : memref<1x16xf32, #tpu.memory_space<vmem>>, vector<1x16xf32>
    tpu.vector_store %arg3[%c0_13, %c0_14], %28 {strides = array<i32>} : memref<1x16xf32, #tpu.memory_space<vmem>>, vector<1x16xf32>,
    return
  }
  func.func @transform_0(%arg0: i32) -> (i32, i32) {
    %c0_i32 = arith.constant 0 : i32
    %c0_i32_0 = arith.constant 0 : i32
    %c0_i32_1 = arith.constant 0 : i32
    return %c0_i32, %c0_i32_0 : i32, i32
  }
  func.func @transform_1(%arg0: i32) -> (i32, i32) {
    %c0_i32 = arith.constant 0 : i32
    %c0_i32_0 = arith.constant 0 : i32
    return %arg0, %c0_i32 : i32, i32
  }
  func.func @transform_2(%arg0: i32) -> (i32, i32) {
    %c0_i32 = arith.constant 0 : i32
    %c0_i32_0 = arith.constant 0 : i32
    return %arg0, %c0_i32 : i32, i32
  }
}

</mosaic_0001>

<bundles_post_ra>
// kernel: mlp_forward.1
= control target key start
LH: loop header
LB: loop body
LE: loop exit
PB: predicated region body
PF: predicated region fallthrough
CT: control target
= control target key end

     0   :  { %7 = vsyncpa [#allocation3], 0  ;;  %s510_s9 = smov [#allocation2]   ;;  %s593_s0 = inlined_call_operand.hbm [shape: f32[392,128], index: 0, kind: input, shape index: {}]   ;;  %s594_s1 = inlined_call_operand.vmem [shape: f32[1,128], index: 1, kind: input, shape index: {}]   ;;  %s595_s2 = inlined_call_operand.vmem [shape: f32[1,16], index: 2, kind: output, shape index: {}]  }
   0x1   :  { %s13_s10 = sshll.u32 %s510_s9, 4  ;;  %s14_s10 = int_to_ptr.vmem [resolvable:$true] %s13_s10 }
   0x2   :  { %s496_s11 = scalar_lea.vmem %s14_s10, 6272  ;;  %p501_p1 = scmp.lt.s32.totalorder %s14_s10, %s14_s10 }
   0x3   :  { %p497_p0 = scmp.ne.s32.totalorder %s14_s10, %s496_s11  ;;  %p502_p2 = scmp.lt.s32.totalorder %s496_s11, %s496_s11 }
   0x5   :  { %p503_p3 = por %p502_p2, %p501_p1 }
   0x7   :  { %p504_p4 = pnand %p503_p3, %p497_p0 }
   0x9   :  { %507 = shalt.err (!%p504_p4)
}
   0xa   :  { %s511_s12 = smov 128   ;;  %s512_s13 = smov 8  }
   0xb   :  { %19 = dma.hbm_to_vmem [thread:$0]  %s593_s0, 6272, %s14_s10, [#allocation3], %s511_s12, %s511_s12, %s512_s13  }
   0xc   :  { %508 = dma.done.wait [#allocation3], 6272  }
   0xd   :  { %509 = vsyncadd [#allocation3], 4294961024  ;;  %v513_v0 = vmov 0.0   ;;  %vm514_vm0 = vmmov 0   ;;  %v41_v1 = vld [vmem:[#allocation2 + $0x78] sm:$0xff]  ;;  %v40_v2 = vld [vmem:[#allocation2 + $0x70] sm:$0xff] }
   0xe   :  { %366 = vmatprep.subr.mxu0 %v513_v0  ;;  %398 = vmatprep.mubr.msk.f32.mxu0 %vm514_vm0, %v513_v0  ;;  %v39_v3 = vld [vmem:[#allocation2 + $0x68] sm:$0xff]  ;;  %v38_v4 = vld [vmem:[#allocation2 + $0x60] sm:$0xff]  ;;  %v37_v5 = vld [vmem:[#allocation2 + $0x58] sm:$0xff]  ;;  %vm305_vm1 = vcmask 122880  }
   0xf   :  { %401 = vmatprep.subr.mxu1 %v513_v0  ;;  %433 = vmatprep.mubr.msk.f32.mxu1 %vm514_vm0, %v513_v0  ;;  %v36_v6 = vld [vmem:[#allocation2 + $0x50] sm:$0xff]  ;;  %v35_v7 = vld [vmem:[#allocation2 + $0x48] sm:$0xff]  ;;  %v34_v8 = vld [vmem:[#allocation2 + $0x40] sm:$0xff] }
  0x10   :  { %367 = vmatpush3.msra.mxu0 %v41_v1  ;;  %v33_v9 = vld [vmem:[#allocation2 + $0x38] sm:$0xff]  ;;  %v32_v10 = vld [vmem:[#allocation2 + $0x30] sm:$0xff]  ;;  %v31_v11 = vld [vmem:[#allocation2 + $0x28] sm:$0xff] }
  0x11   :  { %368 = vmatprep.subr.mxu0 %v513_v0  ;;  %v30_v12 = vld [vmem:[#allocation2 + $0x20] sm:$0xff]  ;;  %v29_v13 = vld [vmem:[#allocation2 + $0x18] sm:$0xff]  ;;  %v28_v14 = vld [vmem:[#allocation2 + $0x10] sm:$0xff] }
  0x12   :  { %369 = vmatpush3.msra.mxu0 %v40_v2  ;;  %v27_v15 = vld [vmem:[#allocation2 + $0x8] sm:$0xff]  ;;  %v26_v16 = vld [vmem:[#allocation2] sm:$0xff]  ;;  %v57_v18 = vld [vmem:[#allocation2 + $0xf8] sm:$0xff] }
  0x13   :  { %370 = vmatprep.subr.mxu0 %v513_v0  ;;  %v25_v17 = vld [vmem:[%s594_s1] sm:$0x1]  ;;  %402 = vmatpush3.msra.mxu1 %v57_v18  ;;  %v56_v19 = vld [vmem:[#allocation2 + $0xf0] sm:$0xff]  ;;  %v55_v20 = vld [vmem:[#allocation2 + $0xe8] sm:$0xff] }
  0x14   :  { %371 = vmatpush3.msra.mxu0 %v39_v3  ;;  %403 = vmatprep.subr.mxu1 %v513_v0  ;;  %v54_v21 = vld [vmem:[#allocation2 + $0xe0] sm:$0xff]  ;;  %v53_v22 = vld [vmem:[#allocation2 + $0xd8] sm:$0xff]  ;;  %v52_v23 = vld [vmem:[#allocation2 + $0xd0] sm:$0xff] }
  0x15   :  { %372 = vmatprep.subr.mxu0 %v513_v0  ;;  %404 = vmatpush3.msra.mxu1 %v56_v19  ;;  %v51_v24 = vld [vmem:[#allocation2 + $0xc8] sm:$0xff]  ;;  %v50_v25 = vld [vmem:[#allocation2 + $0xc0] sm:$0xff]  ;;  %v49_v26 = vld [vmem:[#allocation2 + $0xb8] sm:$0xff] }
  0x16   :  { %373 = vmatpush3.msra.mxu0 %v38_v4  ;;  %405 = vmatprep.subr.mxu1 %v513_v0  ;;  %v48_v27 = vld [vmem:[#allocation2 + $0xb0] sm:$0xff]  ;;  %v47_v28 = vld [vmem:[#allocation2 + $0xa8] sm:$0xff]  ;;  %v46_v29 = vld [vmem:[#allocation2 + $0xa0] sm:$0xff] }
  0x17   :  { %374 = vmatprep.subr.mxu0 %v513_v0  ;;  %406 = vmatpush3.msra.mxu1 %v55_v20  ;;  %v45_v30 = vld [vmem:[#allocation2 + $0x98] sm:$0xff]  ;;  %v44_v31 = vld [vmem:[#allocation2 + $0x90] sm:$0xff]  ;;  %v43_v32 = vld [vmem:[#allocation2 + $0x88] sm:$0xff] }
  0x18   :  { %375 = vmatpush3.msra.mxu0 %v37_v5  ;;  %407 = vmatprep.subr.mxu1 %v513_v0  ;;  %v42_v33 = vld [vmem:[#allocation2 + $0x80] sm:$0xff]  ;;  %v73_v42 = vld [vmem:[#allocation2 + $0x178] sm:$0xff]  ;;  %v72_v43 = vld [vmem:[#allocation2 + $0x170] sm:$0xff] }
  0x19   :  { %376 = vmatprep.subr.mxu0 %v513_v0  ;;  %408 = vmatpush3.msra.mxu1 %v54_v21  ;;  %v74_v34 = vld [vmem:[#allocation2 + $0x180] sm:$0x1]  ;;  %v71_v44 = vld [vmem:[#allocation2 + $0x168] sm:$0xff]  ;;  %v69_v46 = vld [vmem:[#allocation2 + $0x158] sm:$0xff] }
  0x1a   :  { %377 = vmatpush3.msra.mxu0 %v36_v6  ;;  %409 = vmatprep.subr.mxu1 %v513_v0  ;;  %v70_v45 = vld [vmem:[#allocation2 + $0x160] sm:$0xff]  ;;  %v68_v47 = vld [vmem:[#allocation2 + $0x150] sm:$0xff]  ;;  %v67_v48 = vld [vmem:[#allocation2 + $0x148] sm:$0xff] }
  0x1b   :  { %378 = vmatprep.subr.mxu0 %v513_v0  ;;  %410 = vmatpush3.msra.mxu1 %v53_v22  ;;  %v66_v49 = vld [vmem:[#allocation2 + $0x140] sm:$0xff]  ;;  %v65_v50 = vld [vmem:[#allocation2 + $0x138] sm:$0xff]  ;;  %v64_v51 = vld [vmem:[#allocation2 + $0x130] sm:$0xff] }
  0x1c   :  { %379 = vmatpush3.msra.mxu0 %v35_v7  ;;  %411 = vmatprep.subr.mxu1 %v513_v0  ;;  %v63_v52 = vld [vmem:[#allocation2 + $0x128] sm:$0xff]  ;;  %v62_v53 = vld [vmem:[#allocation2 + $0x120] sm:$0xff]  ;;  %v61_v54 = vld [vmem:[#allocation2 + $0x118] sm:$0xff] }
  0x1d   :  { %380 = vmatprep.subr.mxu0 %v513_v0  ;;  %412 = vmatpush3.msra.mxu1 %v52_v23  ;;  %v60_v55 = vld [vmem:[#allocation2 + $0x110] sm:$0xff]  ;;  %v59_v56 = vld [vmem:[#allocation2 + $0x108] sm:$0xff]  ;;  %v58_v57 = vld [vmem:[#allocation2 + $0x100] sm:$0xff] }
  0x1e   :  { %381 = vmatpush3.msra.mxu0 %v34_v8  ;;  %413 = vmatprep.subr.mxu1 %v513_v0  ;;  %v75_v58 = vld [vmem:[#allocation2 + $0x181] sm:$0x1]  ;;  %v76_v3 = vld [vmem:[#allocation2 + $0x182] sm:$0x1] }
  0x1f   :  { %382 = vmatprep.subr.mxu0 %v513_v0  ;;  %414 = vmatpush3.msra.mxu1 %v51_v24 }
  0x20   :  { %383 = vmatpush3.msra.mxu0 %v33_v9  ;;  %415 = vmatprep.subr.mxu1 %v513_v0 }
  0x21   :  { %384 = vmatprep.subr.mxu0 %v513_v0  ;;  %416 = vmatpush3.msra.mxu1 %v50_v25 }
  0x22   :  { %385 = vmatpush3.msra.mxu0 %v32_v10  ;;  %417 = vmatprep.subr.mxu1 %v513_v0 }
  0x23   :  { %386 = vmatprep.subr.mxu0 %v513_v0  ;;  %418 = vmatpush3.msra.mxu1 %v49_v26 }
  0x24   :  { %387 = vmatpush3.msra.mxu0 %v31_v11  ;;  %419 = vmatprep.subr.mxu1 %v513_v0 }
  0x25   :  { %388 = vmatprep.subr.mxu0 %v513_v0  ;;  %420 = vmatpush3.msra.mxu1 %v48_v27 }
  0x26   :  { %389 = vmatpush3.msra.mxu0 %v30_v12  ;;  %421 = vmatprep.subr.mxu1 %v513_v0 }
  0x27   :  { %390 = vmatprep.subr.mxu0 %v513_v0  ;;  %422 = vmatpush3.msra.mxu1 %v47_v28 }
  0x28   :  { %391 = vmatpush3.msra.mxu0 %v29_v13  ;;  %423 = vmatprep.subr.mxu1 %v513_v0 }
  0x29   :  { %392 = vmatprep.subr.mxu0 %v513_v0  ;;  %424 = vmatpush3.msra.mxu1 %v46_v29 }
  0x2a   :  { %393 = vmatpush3.msra.mxu0 %v28_v14  ;;  %425 = vmatprep.subr.mxu1 %v513_v0 }
  0x2b   :  { %394 = vmatprep.subr.mxu0 %v513_v0  ;;  %426 = vmatpush3.msra.mxu1 %v45_v30 }
  0x2c   :  { %395 = vmatpush3.msra.mxu0 %v27_v15  ;;  %427 = vmatprep.subr.mxu1 %v513_v0 }
  0x2d   :  { %396 = vmatprep.subr.mxu0 %v513_v0  ;;  %428 = vmatpush3.msra.mxu1 %v44_v31 }
  0x2e   :  { %397 = vmatpush3.msra.mxu0 %v26_v16  ;;  %429 = vmatprep.subr.mxu1 %v513_v0 }
  0x2f   :  { %399 = vmatmul.mubr.f32.vlgmr.msra.gmra.mxu0 %v25_v17  ;;  %436 = vmatprep.subr.mxu0 %v513_v0 }
  0x30   :  { %468 = vmatprep.mubr.msk.f32.mxu0 %vm514_vm0, %v513_v0  ;;  %430 = vmatpush3.msra.mxu1 %v43_v32 }
  0x31   :  { %431 = vmatprep.subr.mxu1 %v513_v0  ;;  %437 = vmatpush3.msra.mxu0 %v73_v42 }
  0x32   :  { %432 = vmatpush3.msra.mxu1 %v42_v33  ;;  %438 = vmatprep.subr.mxu0 %v513_v0 }
  0x33   :  { %439 = vmatpush3.msra.mxu0 %v72_v43 }
  0x34   :  { %440 = vmatprep.subr.mxu0 %v513_v0 }
  0x35   :  { %441 = vmatpush3.msra.mxu0 %v71_v44 }
  0x36   :  { %442 = vmatprep.subr.mxu0 %v513_v0 }
  0x37   :  { %443 = vmatpush3.msra.mxu0 %v70_v45 }
  0x38   :  { %444 = vmatprep.subr.mxu0 %v513_v0 }
  0x39   :  { %445 = vmatpush3.msra.mxu0 %v69_v46 }
  0x3a   :  { %446 = vmatprep.subr.mxu0 %v513_v0 }
  0x3b   :  { %447 = vmatpush3.msra.mxu0 %v68_v47 }
  0x3c   :  { %448 = vmatprep.subr.mxu0 %v513_v0 }
  0x3d   :  { %449 = vmatpush3.msra.mxu0 %v67_v48 }
  0x3e   :  { %450 = vmatprep.subr.mxu0 %v513_v0 }
  0x3f   :  { %451 = vmatpush3.msra.mxu0 %v66_v49 }
  0x40   :  { %452 = vmatprep.subr.mxu0 %v513_v0 }
  0x41   :  { %453 = vmatpush3.msra.mxu0 %v65_v50 }
  0x42   :  { %454 = vmatprep.subr.mxu0 %v513_v0 }
  0x43   :  { %455 = vmatpush3.msra.mxu0 %v64_v51 }
  0x44   :  { %456 = vmatprep.subr.mxu0 %v513_v0 }
  0x45   :  { %457 = vmatpush3.msra.mxu0 %v63_v52 }
  0x46   :  { %458 = vmatprep.subr.mxu0 %v513_v0 }
  0x47   :  { %459 = vmatpush3.msra.mxu0 %v62_v53 }
  0x48   :  { %460 = vmatprep.subr.mxu0 %v513_v0 }
  0x49   :  { %461 = vmatpush3.msra.mxu0 %v61_v54 }
  0x4a   :  { %462 = vmatprep.subr.mxu0 %v513_v0 }
  0x4b   :  { %463 = vmatpush3.msra.mxu0 %v60_v55 }
  0x4c   :  { %464 = vmatprep.subr.mxu0 %v513_v0 }
  0x4d   :  { %465 = vmatpush3.msra.mxu0 %v59_v56 }
  0x4e   :  { %466 = vmatprep.subr.mxu0 %v513_v0 }
  0x4f   :  { %467 = vmatpush3.msra.mxu0 %v58_v57 }
  0xef   :  { %v143_v35 = vpop.f32.mrf.mxu0 }
  0xf0   :  { %v144_v36 = vadd.f32 %v143_v35, %v74_v34 }
  0xf1   :  { %v400_v37 = vpop.f32.mrf.mxu0 }
  0xf2   :  { %v312_v38 = vmul.f32 -1.442695, %v144_v36 }
  0xf4   :  { %476 = vpow2.f32 %v312_v38 }
 0x101   :  { %v477_v39 = vpop.eup %476 }
 0x102   :  { %v150_v40 = vadd.f32 1.0, %v477_v39 }
 0x104   :  { %478 = vrcp.f32 %v150_v40 }
 0x111   :  { %v479_v41 = vpop.eup %478 }
 0x112   :  { %434 = vmatmul.mubr.f32.vlgmr.msra.gmra.mxu1 %v479_v41 }
 0x1d2   :  { %v219_v59 = vpop.f32.mrf.mxu1 }
 0x1d3   :  { %v220_v60 = vadd.f32 %v219_v59, %v75_v58 }
 0x1d4   :  { %v435_v61 = vpop.f32.mrf.mxu1 }
 0x1d5   :  { %v313_v62 = vmul.f32 -1.442695, %v220_v60 }
 0x1d7   :  { %480 = vpow2.f32 %v313_v62 }
 0x1e4   :  { %v481_v63 = vpop.eup %480 }
 0x1e5   :  { %v226_v1 = vadd.f32 1.0, %v481_v63 }
 0x1e7   :  { %482 = vrcp.f32 %v226_v1 }
 0x1f4   :  { %v483_v2 = vpop.eup %482 }
 0x1f5   :  { %469 = vmatmul.mubr.f32.vlgmr.msra.gmra.mxu0 %v483_v2 }
 0x2b5   :  { %v295_v4 = vpop.f32.mrf.mxu0 }
 0x2b6   :  { %v296_v5 = vadd.f32 %v295_v4, %v76_v3 }
 0x2b7   :  { %v470_v6 = vpop.f32.mrf.mxu0 }
 0x2b8   :  { %v314_v7 = vmul.f32 -1.442695, %v296_v5 }
 0x2ba   :  { %484 = vpow2.f32 %v314_v7 }
 0x2c7   :  { %v485_v8 = vpop.eup %484 }
 0x2c8   :  { %v302_v0 = vadd.f32 1.0, %v485_v8 }
 0x2ca   :  { %486 = vrcp.f32 %v302_v0 }
 0x2d7   :  { %v487_v9 = vpop.eup %486 }
 0x2d8   :  { %306 = vst.msk [vmem:[%s595_s2] sm:$0x1] %vm305_vm1, %v487_v9 }
 0x2d9   :  { %311 = vsyncpa [#allocation3], 1 }

</bundles_post_ra>
